<compile_context>
chip_gen: v7x
topology: tpu7x:2x2x1
jax: 0.10.0
libtpu: 0.0.40
codegen_flags: <defaults>
</compile_context>

<pallas_src>
import math

import jax
import jax.numpy as jnp
from jax.experimental import pallas as pl
from jax.experimental.pallas import tpu as pltpu

_LANES = 128              # vreg lane width
_SUBLANES = 8             # f32 sublane count
_MAX_PATTERN_LANES = 16384  # cap on the flat repeating pattern row (64 KiB f32)


def _round_up(x, m):
    return ((x + m - 1) // m) * m


def _sublane_multiple(dtype):
    # Native sublane tiling: 8 for 4-byte, 16 for 2-byte, 32 for 1-byte dtypes.
    return _SUBLANES * max(1, 4 // jnp.dtype(dtype).itemsize)


def _tile_byte_budget():
    """Per-output-buffer byte budget (the pipeline double-buffers it)."""
    budget = 2 * 1024 * 1024
    try:
        # v7x (64 MiB physical VMEM, ~3.2 TB/s HBM) benefits most from bigger
        # tiles and still has 32 MiB scoped headroom; v5e/v6e stay at 2 MiB
        # tiles (well under v5e's 16 MiB scoped default when double-buffered).
        if pltpu.get_tpu_info().vmem_capacity_bytes <= 64 * 1024 * 1024:
            budget = 4 * 1024 * 1024
    except Exception:  # best-effort hardware query; fall back to 2 MiB
        pass
    return budget


def _pick_row_tile(rows, row_bytes, sub):
    """Row tile: ~budget bytes, multiple of `sub`, >=2 grid steps when possible."""
    if rows <= sub:
        return rows  # single block whose first dim equals the full array extent
    budget_rows = max(sub, (_tile_byte_budget() // row_bytes) // sub * sub)
    tb = min(budget_rows, _round_up(pl.cdiv(rows, 2), sub))
    return max(tb, sub)


# ----------------------------------------------------------------------------
# Kernels
# ----------------------------------------------------------------------------
def _scalar_fill_kernel(const_ref, out_ref):
    # const_ref: (1,) f32 scalar in SMEM; out_ref: (tb, 128) lane-dense tile.
    out_ref[...] = jnp.full(out_ref.shape, const_ref[0], dtype=out_ref.dtype)


def _row_broadcast_kernel(row_ref, out_ref):
    # row_ref: (1, L) constant pattern row in VMEM; out_ref: (tb, L) tile.
    out_ref[...] = jnp.broadcast_to(row_ref[...], out_ref.shape)


# ----------------------------------------------------------------------------
# Pallas-backed paths
# ----------------------------------------------------------------------------
def _forward_scalar(batch, constant_value_param):
    """output_size == 1: uniform scalar fill of a flat lane-dense slab."""
    out_dtype = constant_value_param.dtype
    itemsize = jnp.dtype(out_dtype).itemsize
    sub = _sublane_multiple(out_dtype)

    total = batch                      # output_size == 1
    rows = pl.cdiv(total, _LANES)
    tb = _pick_row_tile(rows, _LANES * itemsize, sub)
    grid = pl.cdiv(rows, tb)

    const_smem = constant_value_param.reshape(1).astype(jnp.float32)

    slab = pl.pallas_call(
        _scalar_fill_kernel,
        out_shape=jax.ShapeDtypeStruct((rows, _LANES), out_dtype),
        grid=(grid,),
        in_specs=[
            # Whole (1,) array lives in SMEM; no vector DMA, read as an sreg.
            pl.BlockSpec(memory_space=pltpu.MemorySpace.SMEM),
        ],
        out_specs=pl.BlockSpec((tb, _LANES), lambda i: (i, 0)),
        compiler_params=pltpu.CompilerParams(
            dimension_semantics=("parallel",)),
        cost_estimate=pl.CostEstimate(
            flops=0, transcendentals=0,
            bytes_accessed=rows * _LANES * itemsize + 4),
    )(const_smem)

    if total % _LANES == 0:
        # rows*128 == total: pure metadata reshape, no second HBM pass.
        return slab.reshape(batch, 1)
    return slab.reshape(-1)[:total].reshape(batch, 1)


def _forward_vector_flat(batch, constant_value_param, pattern_lanes):
    """1 < output_size: flat slab of repeating pattern, ~1x true output bytes."""
    output_size = constant_value_param.shape[0]
    out_dtype = constant_value_param.dtype
    itemsize = jnp.dtype(out_dtype).itemsize
    sub = _sublane_multiple(out_dtype)

    total = batch * output_size
    L = pattern_lanes  # lcm(output_size, 128): every slab row is identical.

    # Tiny wrapper-side op: build the repeating pattern row once.
    pattern = jnp.tile(constant_value_param, L // output_size).reshape(1, L)

    rows = pl.cdiv(total, L)
    tb = _pick_row_tile(rows, L * itemsize, sub)
    grid = pl.cdiv(rows, tb)

    slab = pl.pallas_call(
        _row_broadcast_kernel,
        out_shape=jax.ShapeDtypeStruct((rows, L), out_dtype),
        grid=(grid,),
        in_specs=[
            # Same block index every step -> DMA'd once, stays resident.
            pl.BlockSpec((1, L), lambda i: (0, 0)),
        ],
        out_specs=pl.BlockSpec((tb, L), lambda i: (i, 0)),
        compiler_params=pltpu.CompilerParams(
            dimension_semantics=("parallel",)),
        cost_estimate=pl.CostEstimate(
            flops=0, transcendentals=0,
            bytes_accessed=(rows * L + L) * itemsize),
    )(pattern)

    if total % L == 0:
        # Contiguous: free metadata reshape.
        return slab.reshape(batch, output_size)
    return slab.reshape(-1)[:total].reshape(batch, output_size)


def _forward_vector_padded(batch, constant_value_param):
    """Fallback for very large output_size not a multiple of 128 lanes."""
    output_size = constant_value_param.shape[0]
    out_dtype = constant_value_param.dtype
    itemsize = jnp.dtype(out_dtype).itemsize
    sub = _sublane_multiple(out_dtype)
    c_pad = _round_up(output_size, _LANES)

    if c_pad == output_size:
        const_row = constant_value_param.reshape(1, c_pad)
    else:
        const_row = jnp.zeros((1, c_pad), out_dtype).at[0, :output_size].set(
            constant_value_param)

    tb = _pick_row_tile(batch, c_pad * itemsize, sub)
    grid = pl.cdiv(batch, tb)

    slab = pl.pallas_call(
        _row_broadcast_kernel,
        out_shape=jax.ShapeDtypeStruct((batch, c_pad), out_dtype),
        grid=(grid,),
        in_specs=[pl.BlockSpec((1, c_pad), lambda i: (0, 0))],
        out_specs=pl.BlockSpec((tb, c_pad), lambda i: (i, 0)),
        compiler_params=pltpu.CompilerParams(
            dimension_semantics=("parallel",)),
        cost_estimate=pl.CostEstimate(
            flops=0, transcendentals=0,
            bytes_accessed=(batch * c_pad + c_pad) * itemsize),
    )(const_row)

    if c_pad == output_size:
        return slab
    return slab[:, :output_size]


# ----------------------------------------------------------------------------
# Public forward
# ----------------------------------------------------------------------------
def constant_value_network_forward(x, constant_value_param, *,
                                    min_pallas_elements=65536):
    """Forward pass of ConstantValueNetwork.

    Args:
      x: any array; only x.shape[0] (batch size) is used.
      constant_value_param: (output_size,) constant parameter.
      min_pallas_elements: below this output element count, use a fused XLA
        broadcast instead of launching a Pallas kernel.

    Returns:
      (batch, output_size) array, every row == constant_value_param.
    """
    batch = int(x.shape[0])
    output_size = int(constant_value_param.shape[0])
    total = batch * output_size

    if batch == 0 or total < min_pallas_elements:
        # Tiny output (the module default is output_size=1, small batch): the
        # pallas_call fixed cost dominates by 10-100x; XLA broadcast wins.
        return jnp.broadcast_to(constant_value_param.reshape(1, output_size),
                                (batch, output_size))

    if output_size == 1:
        return _forward_scalar(batch, constant_value_param)

    pattern_lanes = (output_size * _LANES) // math.gcd(output_size, _LANES)
    if pattern_lanes <= _MAX_PATTERN_LANES:
        return _forward_vector_flat(batch, constant_value_param, pattern_lanes)
    # Rare: huge output_size that is not a multiple of 128 lanes.
    return _forward_vector_padded(batch, constant_value_param)


def make_constant_value_params(constant_value=1.0, output_size=1):
    # Mirrors nn.Parameter(torch.tensor([constant_value] * output_size)).
    return jnp.full((output_size,), constant_value, dtype=jnp.float32)


if __name__ == "__main__":
    key = jax.random.PRNGKey(0)

    # Small input consistent with the module (only x.shape[0] is consumed).
    x = jax.random.normal(key, (2, 4, 16, 16), dtype=jnp.float32)

    # --- default module config: constant_value=1.0, output_size=1 ----------
    p1 = make_constant_value_params(1.0, 1)
    exp1 = jnp.broadcast_to(p1[None, :], (x.shape[0], 1))

    # (a) default dispatch: tiny output -> fused XLA broadcast fast path.
    out_fast = jax.block_until_ready(constant_value_network_forward(x, p1))
    assert out_fast.shape == (2, 1), out_fast.shape
    assert out_fast.dtype == p1.dtype, out_fast.dtype
    assert bool(jnp.allclose(out_fast, exp1))

    # (b) force the Pallas scalar-fill kernel on the same small input.
    out_pallas = jax.block_until_ready(
        constant_value_network_forward(x, p1, min_pallas_elements=0))
    assert out_pallas.shape == (2, 1), out_pallas.shape
    assert bool(jnp.allclose(out_pallas, exp1))

    # (c) Pallas scalar path where the trailing reshape is a free metadata op
    #     (batch % 128 == 0).
    x_big = jnp.zeros((1024, 8), jnp.float32)
    out_big = jax.block_until_ready(
        constant_value_network_forward(x_big, p1, min_pallas_elements=0))
    assert out_big.shape == (1024, 1), out_big.shape
    assert bool(jnp.allclose(out_big, 1.0))

    # (d) multi-output (output_size=3) -> flat lane-dense slab kernel.
    p3 = make_constant_value_params(0.5, 3)
    x3 = jax.random.normal(key, (8, 5), dtype=jnp.float32)
    out3 = jax.block_until_ready(
        constant_value_network_forward(x3, p3, min_pallas_elements=0))
    exp3 = jnp.broadcast_to(p3[None, :], (8, 3))
    assert out3.shape == (8, 3), out3.shape
    assert bool(jnp.allclose(out3, exp3))

    # (e) output_size that is a multiple of 128 -> flat path, zero padding.
    p256 = make_constant_value_params(-2.0, 256)
    x256 = jnp.zeros((16, 3), jnp.float32)
    out256 = jax.block_until_ready(
        constant_value_network_forward(x256, p256, min_pallas_elements=0))
    assert out256.shape == (16, 256), out256.shape
    assert bool(jnp.allclose(out256, -2.0))

    # (f) batch == 0 is handled (XLA fast path), matching torch's expand.
    out0 = jax.block_until_ready(
        constant_value_network_forward(jnp.zeros((0, 4), jnp.float32), p1))
    assert out0.shape == (0, 1), out0.shape

    print("KERNEL_OK")
</pallas_src>

<mosaic_0001>
module attributes {stable_mosaic.version = 11 : i64} {
  func.func @_scalar_fill_kernel(%arg0: i32, %arg1: memref<1xf32, #tpu.memory_space<smem>>, %arg2: memref<1x128xf32, #tpu.memory_space<vmem>>) attributes {dimension_semantics = [#tpu.dimension_semantics<parallel>], iteration_bounds = array<i64: 1>, scalar_prefetch = 0 : i64, scratch_operands = 0 : i64, tpu.core_type = #tpu.core_type<tc>, window_params = [{transform_indices = @transform_0, window_bounds = array<i64: 1>}, {transform_indices = @transform_1, window_bounds = array<i64: 1, 128>}]} {
    %c0 = arith.constant 0 : index
    %0 = memref.load %arg1[%c0] : memref<1xf32, #tpu.memory_space<smem>>
    %1 = vector.broadcast %0 : f32 to vector<1x128xf32>
    %c0_0 = arith.constant 0 : index
    %c0_1 = arith.constant 0 : index
    %2 = vector.load %arg2[%c0_0, %c0_1] : memref<1x128xf32, #tpu.memory_space<vmem>>, vector<1x128xf32>
    tpu.vector_store %arg2[%c0_0, %c0_1], %1 {strides = array<i32>} : memref<1x128xf32, #tpu.memory_space<vmem>>, vector<1x128xf32>,
    return
  }
  func.func @transform_0(%arg0: i32) -> i32 {
    %c0_i32 = arith.constant 0 : i32
    %c0_i32_0 = arith.constant 0 : i32
    return %c0_i32 : i32
  }
  func.func @transform_1(%arg0: i32) -> (i32, i32) {
    %c0_i32 = arith.constant 0 : i32
    %c0_i32_0 = arith.constant 0 : i32
    return %arg0, %c0_i32 : i32, i32
  }
}

</mosaic_0001>

<bundles_post_ra>
// kernel: tpu_custom_call.1
= control target key start
LH: loop header
LB: loop body
LE: loop exit
PB: predicated region body
PF: predicated region fallthrough
CT: control target
= control target key end

     0   :  { %s78_s0 = inlined_call_operand.<no memory space> [shape: f32[1], index: 0, kind: input, shape index: {}]   ;;  %s79_s1 = inlined_call_operand.hbm [shape: f32[1,128], index: 1, kind: output, shape index: {}]  }
   0x1   :  { %v11_v0 = vstv %s78_s0 }
   0x2   :  { %7 = vsyncpa [#allocation4], 0  ;;  %12 = vst [vmem:[#allocation3] sm:$0x1] %v11_v0  ;;  %s52_s8 = smov [#allocation3]  }
   0x3   :  { %s19_s9 = sshll.u32 %s52_s8, 4  ;;  %s20_s9 = int_to_ptr.vmem [resolvable:$true] %s19_s9 }
   0x4   :  { %s28_s10 = scalar_lea.vmem %s20_s9, 16  ;;  %s32_s11 = scalar_lea.vmem %s20_s9, 32 }
   0x5   :  { %p29_p0 = scmp.ne.s32.totalorder %s20_s9, %s28_s10  ;;  %p33_p1 = scmp.lt.s32.totalorder %s20_s9, %s20_s9 }
   0x6   :  { %p34_p2 = scmp.lt.s32.totalorder %s32_s11, %s28_s10 }
   0x8   :  { %p35_p3 = por %p34_p2, %p33_p1 }
   0xa   :  { %p36_p4 = pnand %p35_p3, %p29_p0 }
   0xc   :  { %39 = shalt.err (!%p36_p4)
}
   0xd   :  { %s40_s14 = scalar_lea.hbm %s79_s1, 16 }
   0xe   :  { %p41_p5 = scmp.ne.s32.totalorder %s79_s1, %s40_s14  ;;  %p44_p6 = scmp.lt.u32.totalorder %s40_s14, %s79_s1 }
  0x10   :  { %p46_p7 = pnand %p44_p6, %p41_p5 }
  0x12   :  { %49 = shalt.err (!%p46_p7)
}
  0x13   :  { %22 = dma.vmem_to_hbm [thread:$0]  %s20_s9, 16, %s79_s1, [#allocation4]  }
  0x14   :  { %50 = dma.done.wait [#allocation4], 16  }
  0x15   :  { %51 = vsyncadd [#allocation4], 4294967280 }
  0x16   :  { %26 = vsyncpa [#allocation4], 1 }

</bundles_post_ra>
